<compile_context>
chip_gen: v5e
topology: v5e:2x2
jax: 0.10.0
libtpu: 0.0.40
codegen_flags: <defaults>
</compile_context>

<pallas_src>
import jax
import jax.numpy as jnp
from jax.experimental import pallas as pl
from jax.experimental.pallas import tpu as pltpu


def _round_up(x, m):
    return (x + m - 1) // m * m


def _mlp_kernel(x_ref, w1_ref, b1_ref, w2_ref, b2_ref, o_ref):
    # x streams from HBM as f32; cast to bf16 in-register for the MXU
    # (no wrapper-side pad/cast round-trip through HBM).
    x = x_ref[...].astype(jnp.bfloat16)
    h = jnp.dot(x, w1_ref[...], preferred_element_type=jnp.float32)
    h = jnp.tanh(h + b1_ref[...])                 # f32 bias-add + tanh (VPU/EUP)
    o_ref[...] = (
        jnp.dot(h.astype(w2_ref.dtype), w2_ref[...],
                preferred_element_type=jnp.float32)
        + b2_ref[...]
    ).astype(o_ref.dtype)


def prepare_base_architecture_params(w1, b1, w2, b2):
    """One-time weight prep: pad the hidden dim to a lane-dense multiple of
    128 and cast weights to bf16.  Zero padding is exact (padded hidden units
    are tanh(0 + 0) = 0 against zero W2 rows).  Call once and reuse."""
    w1 = jnp.asarray(w1, jnp.float32)
    w2 = jnp.asarray(w2, jnp.float32)
    b1 = jnp.atleast_2d(jnp.asarray(b1, jnp.float32))   # torch biases are 1-D (H,)
    b2 = jnp.atleast_2d(jnp.asarray(b2, jnp.float32))
    h = w1.shape[1]
    h_p = _round_up(h, 128)
    return {
        "w1": jnp.pad(w1, ((0, 0), (0, h_p - h))).astype(jnp.bfloat16),
        "b1": jnp.pad(b1, ((0, 0), (0, h_p - h))),
        "w2": jnp.pad(w2, ((0, h_p - h), (0, 0))).astype(jnp.bfloat16),
        "b2": b2,
    }


def _pick_tile_m(B):
    # Block sublane dim must be divisible by 8 or equal the full array dim.
    if B <= 16 or B % 8 != 0:
        return B
    # >= 2 grid steps so the "parallel" batch axis shards across v7x's two
    # TensorCores; cap at 512 rows for HBM-streaming efficiency (per-step
    # VMEM stays far below the 32 MiB scoped limit on v5e/v6e/v7x).
    return min(512, min(B, _round_up((B + 1) // 2, 16)))


@jax.jit
def base_architecture_forward(x, params):
    """Fused Linear->tanh->Linear; returns Dict[str, Array] like the torch
    module.  `params` must come from prepare_base_architecture_params()."""
    x = jnp.asarray(x, jnp.float32)
    B, d_in = x.shape
    h_p = params["w1"].shape[1]
    d_out = params["w2"].shape[1]

    tile_m = _pick_tile_m(B)
    grid = (pl.cdiv(B, tile_m),)

    cost = pl.CostEstimate(
        flops=2 * B * (d_in * h_p + h_p * d_out),
        transcendentals=B * h_p,
        bytes_accessed=(x.size * 4
                        + params["w1"].size * 2 + params["w2"].size * 2
                        + params["b1"].size * 4 + params["b2"].size * 4
                        + B * d_out * 4),
    )

    # TODO(synk): if D_in ever grows so large that W1 cannot stay VMEM-resident
    # (size against v7x's 64 MiB physical / 32 MiB scoped VMEM), add a trailing
    # "arbitrary" reduction grid axis with a f32 VMEM accumulator instead of
    # shrinking lane dims.
    out = pl.pallas_call(
        _mlp_kernel,
        out_shape=jax.ShapeDtypeStruct((B, d_out), jnp.float32),
        grid=grid,
        in_specs=[
            # x: streamed per batch tile; last dim full-extent (== d_in).
            pl.BlockSpec((tile_m, d_in), lambda i: (i, 0)),
            # Weights / biases: constant index_map -> resident in VMEM
            # across all batch tiles.
            pl.BlockSpec((d_in, h_p), lambda i: (0, 0)),
            pl.BlockSpec((1, h_p), lambda i: (0, 0)),
            pl.BlockSpec((h_p, d_out), lambda i: (0, 0)),
            pl.BlockSpec((1, d_out), lambda i: (0, 0)),
        ],
        out_specs=pl.BlockSpec((tile_m, d_out), lambda i: (i, 0)),
        compiler_params=pltpu.CompilerParams(
            dimension_semantics=("parallel",),
            vmem_limit_bytes=32 * 1024 * 1024,
        ),
        cost_estimate=cost,
    )(x, params["w1"], params["b1"], params["w2"], params["b2"])

    # Dict output mirrors BaseArchitecture.forward() -> Dict[str, torch.Tensor]
    return {"output": out}


if __name__ == "__main__":
    # TODO(synk): set_save_path / save_model / swap_grad_state are host-side
    # filesystem & autograd bookkeeping with no Pallas equivalent; omitted.
    B, D_in, H, D_out = 64, 32, 128, 32

    key = jax.random.PRNGKey(0)
    kx, k1, k2, k3, k4 = jax.random.split(key, 5)

    x = jax.random.normal(kx, (B, D_in), dtype=jnp.float32)
    w1 = jax.random.normal(k1, (D_in, H), dtype=jnp.float32) * 0.1
    b1 = jax.random.normal(k2, (H,), dtype=jnp.float32) * 0.1       # torch-style 1-D bias
    w2 = jax.random.normal(k3, (H, D_out), dtype=jnp.float32) * 0.1
    b2 = jax.random.normal(k4, (D_out,), dtype=jnp.float32) * 0.1

    params = prepare_base_architecture_params(w1, b1, w2, b2)       # one-time prep
    out = base_architecture_forward(x, params)
    y = jax.block_until_ready(out["output"])

    # f32 reference; kernel matmuls run in bf16 with f32 accumulation, so the
    # comparison tolerance is set to bf16 precision (documented behavior).
    y_ref = jnp.tanh(x @ w1 + b1[None, :]) @ w2 + b2[None, :]
    assert y.shape == (B, D_out)
    assert jnp.allclose(y, y_ref, atol=3e-2, rtol=3e-2), float(
        jnp.max(jnp.abs(y - y_ref))
    )

    print("KERNEL_OK")
</pallas_src>

<mosaic_0001>
module attributes {stable_mosaic.version = 11 : i64} {
  func.func @_mlp_kernel(%arg0: i32, %arg1: memref<32x32xf32, #tpu.memory_space<vmem>>, %arg2: memref<32x128xbf16, #tpu.memory_space<vmem>>, %arg3: memref<1x128xf32, #tpu.memory_space<vmem>>, %arg4: memref<128x32xbf16, #tpu.memory_space<vmem>>, %arg5: memref<1x32xf32, #tpu.memory_space<vmem>>, %arg6: memref<32x32xf32, #tpu.memory_space<vmem>>) attributes {dimension_semantics = [#tpu.dimension_semantics<parallel>], iteration_bounds = array<i64: 2>, scalar_prefetch = 0 : i64, scratch_operands = 0 : i64, tpu.core_type = #tpu.core_type<tc>, window_params = [{transform_indices = @transform_0, window_bounds = array<i64: 32, 32>}, {pipeline_mode = #tpu.pipeline_mode<synchronous>, transform_indices = @transform_1, window_bounds = array<i64: 32, 128>}, {pipeline_mode = #tpu.pipeline_mode<synchronous>, transform_indices = @transform_2, window_bounds = array<i64: 1, 128>}, {pipeline_mode = #tpu.pipeline_mode<synchronous>, transform_indices = @transform_3, window_bounds = array<i64: 128, 32>}, {pipeline_mode = #tpu.pipeline_mode<synchronous>, transform_indices = @transform_4, window_bounds = array<i64: 1, 32>}, {transform_indices = @transform_5, window_bounds = array<i64: 32, 32>}]} {
    %c0 = arith.constant 0 : index
    %c0_0 = arith.constant 0 : index
    %0 = vector.load %arg1[%c0, %c0_0] : memref<32x32xf32, #tpu.memory_space<vmem>>, vector<32x32xf32>
    %1 = arith.truncf %0 : vector<32x32xf32> to vector<32x32xbf16>
    %c0_1 = arith.constant 0 : index
    %c0_2 = arith.constant 0 : index
    %2 = vector.load %arg2[%c0_1, %c0_2] : memref<32x128xbf16, #tpu.memory_space<vmem>>, vector<32x128xbf16>
    %cst = arith.constant dense<0.000000e+00> : vector<32x128xf32>
    %3 = tpu.matmul %1, %2, %cst {dimension_numbers = #tpu.dot_dimension_numbers<[1], [0], [0], [1], [0, 0, 1, 1], [], []>} : vector<32x32xbf16>, vector<32x128xbf16>, vector<32x128xf32> -> vector<32x128xf32>
    %c0_3 = arith.constant 0 : index
    %c0_4 = arith.constant 0 : index
    %4 = vector.load %arg3[%c0_3, %c0_4] : memref<1x128xf32, #tpu.memory_space<vmem>>, vector<1x128xf32>
    %5 = vector.broadcast %4 : vector<1x128xf32> to vector<32x128xf32>
    %6 = arith.addf %3, %5 : vector<32x128xf32>
    %7 = math.tanh %6 : vector<32x128xf32>
    %8 = arith.truncf %7 : vector<32x128xf32> to vector<32x128xbf16>
    %c0_5 = arith.constant 0 : index
    %c0_6 = arith.constant 0 : index
    %9 = vector.load %arg4[%c0_5, %c0_6] : memref<128x32xbf16, #tpu.memory_space<vmem>>, vector<128x32xbf16>
    %cst_7 = arith.constant dense<0.000000e+00> : vector<32x32xf32>
    %10 = tpu.matmul %8, %9, %cst_7 {dimension_numbers = #tpu.dot_dimension_numbers<[1], [0], [0], [1], [0, 0, 1, 1], [], []>} : vector<32x128xbf16>, vector<128x32xbf16>, vector<32x32xf32> -> vector<32x32xf32>
    %c0_8 = arith.constant 0 : index
    %c0_9 = arith.constant 0 : index
    %11 = vector.load %arg5[%c0_8, %c0_9] : memref<1x32xf32, #tpu.memory_space<vmem>>, vector<1x32xf32>
    %12 = vector.broadcast %11 : vector<1x32xf32> to vector<32x32xf32>
    %13 = arith.addf %10, %12 : vector<32x32xf32>
    %c0_10 = arith.constant 0 : index
    %c0_11 = arith.constant 0 : index
    %14 = vector.load %arg6[%c0_10, %c0_11] : memref<32x32xf32, #tpu.memory_space<vmem>>, vector<32x32xf32>
    tpu.vector_store %arg6[%c0_10, %c0_11], %13 {strides = array<i32>} : memref<32x32xf32, #tpu.memory_space<vmem>>, vector<32x32xf32>,
    return
  }
  func.func @transform_0(%arg0: i32) -> (i32, i32) {
    %c0_i32 = arith.constant 0 : i32
    %c0_i32_0 = arith.constant 0 : i32
    return %arg0, %c0_i32 : i32, i32
  }
  func.func @transform_1(%arg0: i32) -> (i32, i32) {
    %c0_i32 = arith.constant 0 : i32
    %c0_i32_0 = arith.constant 0 : i32
    %c0_i32_1 = arith.constant 0 : i32
    return %c0_i32, %c0_i32_0 : i32, i32
  }
  func.func @transform_2(%arg0: i32) -> (i32, i32) {
    %c0_i32 = arith.constant 0 : i32
    %c0_i32_0 = arith.constant 0 : i32
    %c0_i32_1 = arith.constant 0 : i32
    return %c0_i32, %c0_i32_0 : i32, i32
  }
  func.func @transform_3(%arg0: i32) -> (i32, i32) {
    %c0_i32 = arith.constant 0 : i32
    %c0_i32_0 = arith.constant 0 : i32
    %c0_i32_1 = arith.constant 0 : i32
    return %c0_i32, %c0_i32_0 : i32, i32
  }
  func.func @transform_4(%arg0: i32) -> (i32, i32) {
    %c0_i32 = arith.constant 0 : i32
    %c0_i32_0 = arith.constant 0 : i32
    %c0_i32_1 = arith.constant 0 : i32
    return %c0_i32, %c0_i32_0 : i32, i32
  }
  func.func @transform_5(%arg0: i32) -> (i32, i32) {
    %c0_i32 = arith.constant 0 : i32
    %c0_i32_0 = arith.constant 0 : i32
    return %arg0, %c0_i32 : i32, i32
  }
}

</mosaic_0001>

<bundles_post_ra>
// kernel: base_architecture_forward.1
= control target key start
LH: loop header
LB: loop body
LE: loop exit
PB: predicated region body
PF: predicated region fallthrough
CT: control target
= control target key end

     0   :  { %s561_s18 = smov 0   ;;  %s627_s0 = inlined_call_operand.vmem [shape: f32[64,32], index: 0, kind: input, shape index: {}]   ;;  %s628_s1 = inlined_call_operand.vmem [shape: bf16[32,128], index: 1, kind: input, shape index: {}]   ;;  %s629_s2 = inlined_call_operand.vmem [shape: f32[1,128], index: 2, kind: input, shape index: {}]   ;;  %s630_s3 = inlined_call_operand.vmem [shape: bf16[128,32], index: 3, kind: input, shape index: {}]   ;;  %s631_s4 = inlined_call_operand.vmem [shape: f32[1,32], index: 4, kind: input, shape index: {}]   ;;  %s632_s5 = inlined_call_operand.vmem [shape: f32[64,32], index: 5, kind: output, shape index: {}]  }
   0x1 LB: > { %s434_s19 = sadd.s32 4294967295, %s529_s18   ;;  %p438_p0 = scmp.ge.s32.totalorder %s529_s18, 1  ;;  %s529_s18 = sphi %s561_s18, %s15_s18  }
   0x2   : > { %p188_p1 = scmp.lt.s32.totalorder %s529_s18, 3 }
   0x4   : > { %p189_p2 = pnand %p438_p0, %p188_p1 }
   0x5   : > { %s439_s22 = sshll.u32 (!%p189_p2), %s434_s19, 2 }
   0x6   : > { %192 = sbr.rel (%p189_p2) target bundleno = 323 (0x143), region = 40  ;;  %p217_p3 = scmp.lt.s32.totalorder (!%p189_p2), %s439_s22, 7 }
   0xb   : > { %v488_v0 = vld [vmem:[%s628_s1 + $0x8] sm:$0xff]  ;;  %v496_v1 = vld [vmem:[%s630_s3 + $0x38] sm:$0xff]  ;;  %v487_v2 = vld [vmem:[%s628_s1] sm:$0xff]  ;;  %s634_s22 = smov (!%p217_p3, %s439_s22), 7  ;;  %vm255_vm0 = vcmask 261120  }
   0xc   : > { %268 = vmatpush.bf16.msra.mxu0 %v488_v0  ;;  %355 = vmatpush.bf16.msra.mxu1 %v496_v1  ;;  %v495_v3 = vld [vmem:[%s630_s3 + $0x30] sm:$0xff]  ;;  %s440_s29 = sshll.u32 %s634_s22, 3  ;;  %v494_v4 = vld [vmem:[%s630_s3 + $0x28] sm:$0xff]  ;;  %v493_v11 = vld [vmem:[%s630_s3 + $0x20] sm:$0xff] }
   0xd   : > { %497 = vmatpush.bf16.msra.mxu2 %v496_v1  ;;  %s220_s7 = scalar_lea.vmem %s627_s0, %s440_s29  ;;  %v492_v12 = vld [vmem:[%s630_s3 + $0x18] sm:$0xff]  ;;  %v491_v13 = vld [vmem:[%s630_s3 + $0x10] sm:$0xff]  ;;  %v490_v14 = vld [vmem:[%s630_s3 + $0x8] sm:$0xff]  ;;  %s226_s28 = scalar_lea.vmem %s632_s5, %s440_s29 }
   0xe   : > { %v229_v5 = vld [vmem:[%s220_s7] sm:$0xff]  ;;  %v230_v6 = vld [vmem:[%s220_s7 + $0x8] sm:$0xff]  ;;  %v231_v8 = vld [vmem:[%s220_s7 + $0x10] sm:$0xff] }
   0xf   : > { %v233_v7 = vpack.c.bf16 %v230_v6, %v229_v5  ;;  %v232_v9 = vld [vmem:[%s220_s7 + $0x18] sm:$0xff]  ;;  %v489_v15 = vld [vmem:[%s630_s3] sm:$0xff] }
  0x10   : > { %269 = vmatpush.bf16.msra.mxu0 %v487_v2  ;;  %356 = vmatpush.bf16.msra.mxu1 %v495_v3  ;;  %v234_v10 = vpack.c.bf16 %v232_v9, %v231_v8  ;;  %v513_v17 = vld [vmem:[%s629_s2] ss:$0 sm:$0xff] }
  0x11   : > { %498 = vmatpush.bf16.msra.mxu2 %v495_v3  ;;  %v514_v31 = vld [vmem:[%s631_s4] ss:$0 sm:$0xff] }
  0x13   : > { %451 = vmatmul.msk.bf16.vlgmr.msra.gmra.mxu0 %vm255_vm0, %v233_v7 }
  0x14   : > { %357 = vmatpush.bf16.msra.mxu1 %v494_v4 }
  0x15   : > { %499 = vmatpush.bf16.msra.mxu2 %v494_v4 }
  0x18   : > { %358 = vmatpush.bf16.msra.mxu1 %v493_v11 }
  0x19   : > { %500 = vmatpush.bf16.msra.mxu2 %v493_v11 }
  0x1c   : > { %359 = vmatpush.bf16.msra.mxu1 %v492_v12 }
  0x1d   : > { %501 = vmatpush.bf16.msra.mxu2 %v492_v12 }
  0x20   : > { %360 = vmatpush.bf16.msra.mxu1 %v491_v13 }
  0x21   : > { %502 = vmatpush.bf16.msra.mxu2 %v491_v13 }
  0x23   : > { %452 = vmatmul.msk.bf16.gmra.mxu0 %vm255_vm0, %v234_v10 }
  0x24   : > { %361 = vmatpush.bf16.msra.mxu1 %v490_v14 }
  0x25   : > { %503 = vmatpush.bf16.msra.mxu2 %v490_v14 }
  0x28   : > { %362 = vmatpush.bf16.msra.mxu1 %v489_v15 }
  0x29   : > { %504 = vmatpush.bf16.msra.mxu2 %v489_v15 }
  0x90   : > { %v271_v16 = vpop.f32.mrf.mxu0 }
  0x91   : > { %v272_v18 = vadd.f32 %v513_v17, %v271_v16 }
  0x93   : > { %515 = vtanh.f32 %v272_v18 }
  0x98   : > { %v273_v19 = vpop.f32.mrf.mxu0 }
  0x99   : > { %v274_v20 = vadd.f32 %v513_v17, %v273_v19  ;;  %v516_v21 = vpop.eup %515 }
  0x9b   : > { %517 = vtanh.f32 %v274_v20 }
  0xa0   : > { %v276_v22 = vpop.f32.mrf.mxu0 }
  0xa1   : > { %v518_v23 = vpop.eup %517  ;;  %v277_v25 = vadd.f32 %v513_v17, %v276_v22 }
  0xa2   : > { %v285_v24 = vpack.c.bf16 %v518_v23, %v516_v21 }
  0xa3   : > { %519 = vtanh.f32 %v277_v25 }
  0xa4   : > { %363 = vmatmul.bf16.vlgmr.msra.gmra.mxu1 %v285_v24 }
  0xa8   : > { %v278_v26 = vpop.f32.mrf.mxu0 }
  0xa9   : > { %v279_v27 = vadd.f32 %v513_v17, %v278_v26  ;;  %v520_v28 = vpop.eup %519 }
  0xab   : > { %521 = vtanh.f32 %v279_v27 }
  0xb1   : > { %v522_v29 = vpop.eup %521 }
  0xb2   : > { %v286_v30 = vpack.c.bf16 %v522_v29, %v520_v28 }
  0xb4   : > { %368 = vmatmul.bf16.vlgmr.msra.gmra.mxu2 %v286_v30 }
 0x121   : > { %v364_v32 = vpop.f32.mrf.mxu1 }
 0x122   : > { %v365_v33 = vadd.f32 %v514_v31, %v364_v32 }
 0x124   : > { %374 = vst.msk [vmem:[%s226_s28] sm:$0xff] %vm255_vm0, %v365_v33 }
 0x129   : > { %v366_v34 = vpop.f32.mrf.mxu1 }
 0x12a   : > { %v367_v35 = vadd.f32 %v514_v31, %v366_v34 }
 0x12c   : > { %375 = vst.msk [vmem:[%s226_s28 + $0x8] sm:$0xff] %vm255_vm0, %v367_v35 }
 0x137   : > { %v369_v36 = vpop.f32.mrf.mxu2 }
 0x138   : > { %v370_v37 = vadd.f32 %v514_v31, %v369_v36 }
 0x13a   : > { %376 = vst.msk [vmem:[%s226_s28 + $0x10] sm:$0xff] %vm255_vm0, %v370_v37 }
 0x13f   : > { %v371_v38 = vpop.f32.mrf.mxu2 }
 0x140   : > { %v372_v39 = vadd.f32 %v514_v31, %v371_v38 }
 0x142   : > { %377 = vst.msk [vmem:[%s226_s28 + $0x18] sm:$0xff] %vm255_vm0, %v372_v39 }
 0x143 PF: > { %s15_s18 = sadd.s32 1, %s529_s18  }
 0x144   : > { %p12_p4 = scmp.ge.s32.totalorder %s15_s18, 4  }
 0x146   :  { %14 = sbr.rel (!%p12_p4) target bundleno = 1 (0x1), region = 70 }

</bundles_post_ra>
